<compile_context>
chip_gen: v7x
topology: tpu7x:2x2x1
jax: 0.10.0
libtpu: 0.0.40
codegen_flags: <defaults>
</compile_context>

<pallas_src>
import jax
import jax.numpy as jnp
from jax.experimental import pallas as pl
from jax.experimental.pallas import tpu as pltpu

LANES = 128
SUBLANES = 8


def _giou_partial_kernel(pred_ref, targ_ref, out_ref):
    # pred_ref / targ_ref: f32[4, TILE_M, 128]  (rows: x, y, w, h)
    # out_ref:             f32[1, 8, 128]       per-tile per-lane partial sums
    px1 = pred_ref[0]
    py1 = pred_ref[1]
    px2 = px1 + pred_ref[2]
    py2 = py1 + pred_ref[3]

    tx1 = targ_ref[0]
    ty1 = targ_ref[1]
    tx2 = tx1 + targ_ref[2]
    ty2 = ty1 + targ_ref[3]

    # Intersection: clamp the *product* at 0 (torch.clamp(inter_area, min=0)).
    inter_w = jnp.minimum(px2, tx2) - jnp.maximum(px1, tx1)
    inter_h = jnp.minimum(py2, ty2) - jnp.maximum(py1, ty1)
    inter_area = jnp.maximum(inter_w * inter_h, 0.0)

    # Union.
    pred_area = (px2 - px1) * (py2 - py1)
    targ_area = (tx2 - tx1) * (ty2 - ty1)
    union_area = pred_area + targ_area - inter_area

    iou = inter_area / (union_area + 1e-6)

    # Smallest enclosing box.
    enc_w = jnp.maximum(px2, tx2) - jnp.minimum(px1, tx1)
    enc_h = jnp.maximum(py2, ty2) - jnp.minimum(py1, ty1)
    enclose_area = enc_w * enc_h

    giou = iou - (enclose_area - union_area) / (enclose_area + 1e-6)

    # Fold the TILE_M sublanes down to a single (8, 128) vreg slab.
    # The reshape is layout-preserving and the axis-0 sum lowers to plain
    # element-wise vreg adds (no cross-lane work in the steady-state loop).
    tile_m = giou.shape[0]
    partial = jnp.sum(giou.reshape(tile_m // SUBLANES, SUBLANES, LANES), axis=0)
    out_ref[0] = partial


def giou_loss(pred, target, *, tile_m=1024):
    """pred, target: f32[N, 4] boxes in (x, y, w, h). Returns scalar f32 loss."""
    assert pred.shape == target.shape and pred.shape[-1] == 4
    n = pred.shape[0]
    assert n > 0

    # Rows of 128 boxes needed; round tile size to a sublane multiple and the
    # padded row count to a tile multiple so the grid divides evenly.
    rows = pl.cdiv(n, LANES)
    tm = min(tile_m, ((rows + SUBLANES - 1) // SUBLANES) * SUBLANES)
    rows_p = ((rows + tm - 1) // tm) * tm
    num_tiles = rows_p // tm
    total_boxes = rows_p * LANES

    def prep(b):
        # (N, 4) -> zero-padded (total_boxes, 4) -> coordinate-major
        # (4, rows_p, 128) dense slab.  Zero-padded boxes contribute giou == 0.
        b = jnp.asarray(b, jnp.float32)
        b = jnp.pad(b, ((0, total_boxes - n), (0, 0)))
        return b.T.reshape(4, rows_p, LANES)

    pred_t = prep(pred)
    targ_t = prep(target)

    partials = pl.pallas_call(
        _giou_partial_kernel,
        out_shape=jax.ShapeDtypeStruct((num_tiles, SUBLANES, LANES), jnp.float32),
        grid=(num_tiles,),
        in_specs=[
            pl.BlockSpec((4, tm, LANES), lambda i: (0, i, 0)),
            pl.BlockSpec((4, tm, LANES), lambda i: (0, i, 0)),
        ],
        out_specs=pl.BlockSpec((1, SUBLANES, LANES), lambda i: (i, 0, 0)),
        compiler_params=pltpu.CompilerParams(
            dimension_semantics=("parallel",),
            vmem_limit_bytes=32 * 1024 * 1024,
        ),
    )(pred_t, targ_t)

    # Tiny final combine: total GIoU over the N real boxes -> loss.
    return 1.0 - jnp.sum(partials) / jnp.float32(n)


def _giou_loss_ref(pred, target):
    """Pure-JAX reference mirroring the PyTorch module exactly."""
    def convert(b):
        x1 = b[:, 0]
        y1 = b[:, 1]
        x2 = b[:, 0] + b[:, 2]
        y2 = b[:, 1] + b[:, 3]
        return jnp.stack([x1, y1, x2, y2], axis=1)

    p = convert(pred)
    t = convert(target)
    inter = (jnp.minimum(p[:, 2], t[:, 2]) - jnp.maximum(p[:, 0], t[:, 0])) * (
        jnp.minimum(p[:, 3], t[:, 3]) - jnp.maximum(p[:, 1], t[:, 1]))
    inter = jnp.maximum(inter, 0.0)
    union = (p[:, 2] - p[:, 0]) * (p[:, 3] - p[:, 1]) + \
            (t[:, 2] - t[:, 0]) * (t[:, 3] - t[:, 1]) - inter
    iou = inter / (union + 1e-6)
    enc = (jnp.maximum(p[:, 2], t[:, 2]) - jnp.minimum(p[:, 0], t[:, 0])) * (
        jnp.maximum(p[:, 3], t[:, 3]) - jnp.minimum(p[:, 1], t[:, 1]))
    giou = iou - (enc - union) / (enc + 1e-6)
    return 1.0 - giou.mean()


if __name__ == "__main__":
    key = jax.random.PRNGKey(0)
    k1, k2, k3, k4 = jax.random.split(key, 4)
    n = 8  # number of boxes
    # boxes in (x, y, w, h) with positive widths/heights
    pred = jnp.concatenate(
        [jax.random.uniform(k1, (n, 2)) * 10.0,
         jax.random.uniform(k2, (n, 2)) * 5.0 + 0.5], axis=1)
    target = jnp.concatenate(
        [jax.random.uniform(k3, (n, 2)) * 10.0,
         jax.random.uniform(k4, (n, 2)) * 5.0 + 0.5], axis=1)

    loss = giou_loss(pred, target)
    jax.block_until_ready(loss)

    ref = _giou_loss_ref(pred, target)
    assert jnp.allclose(loss, ref, atol=1e-5, rtol=1e-5), (loss, ref)
    print("KERNEL_OK")
</pallas_src>

<mosaic_0001>
module attributes {stable_mosaic.version = 11 : i64} {
  func.func @_giou_partial_kernel(%arg0: i32, %arg1: memref<4x8x128xf32, #tpu.memory_space<vmem>>, %arg2: memref<4x8x128xf32, #tpu.memory_space<vmem>>, %arg3: memref<1x8x128xf32, #tpu.memory_space<vmem>>) attributes {dimension_semantics = [#tpu.dimension_semantics<parallel>], iteration_bounds = array<i64: 1>, scalar_prefetch = 0 : i64, scratch_operands = 0 : i64, tpu.core_type = #tpu.core_type<tc>, window_params = [{transform_indices = @transform_0, window_bounds = array<i64: 4, 8, 128>}, {transform_indices = @transform_1, window_bounds = array<i64: 4, 8, 128>}, {transform_indices = @transform_2, window_bounds = array<i64: 1, 8, 128>}]} {
    %c0 = arith.constant 0 : index
    %c0_0 = arith.constant 0 : index
    %c0_1 = arith.constant 0 : index
    %0 = vector.load %arg1[%c0, %c0_0, %c0_1] : memref<4x8x128xf32, #tpu.memory_space<vmem>>, vector<1x8x128xf32>
    %1 = vector.shape_cast %0 : vector<1x8x128xf32> to vector<8x128xf32>
    %c1 = arith.constant 1 : index
    %c0_2 = arith.constant 0 : index
    %c0_3 = arith.constant 0 : index
    %2 = vector.load %arg1[%c1, %c0_2, %c0_3] : memref<4x8x128xf32, #tpu.memory_space<vmem>>, vector<1x8x128xf32>
    %3 = vector.shape_cast %2 : vector<1x8x128xf32> to vector<8x128xf32>
    %c2 = arith.constant 2 : index
    %c0_4 = arith.constant 0 : index
    %c0_5 = arith.constant 0 : index
    %4 = vector.load %arg1[%c2, %c0_4, %c0_5] : memref<4x8x128xf32, #tpu.memory_space<vmem>>, vector<1x8x128xf32>
    %5 = vector.shape_cast %4 : vector<1x8x128xf32> to vector<8x128xf32>
    %6 = arith.addf %1, %5 : vector<8x128xf32>
    %c3 = arith.constant 3 : index
    %c0_6 = arith.constant 0 : index
    %c0_7 = arith.constant 0 : index
    %7 = vector.load %arg1[%c3, %c0_6, %c0_7] : memref<4x8x128xf32, #tpu.memory_space<vmem>>, vector<1x8x128xf32>
    %8 = vector.shape_cast %7 : vector<1x8x128xf32> to vector<8x128xf32>
    %9 = arith.addf %3, %8 : vector<8x128xf32>
    %c0_8 = arith.constant 0 : index
    %c0_9 = arith.constant 0 : index
    %c0_10 = arith.constant 0 : index
    %10 = vector.load %arg2[%c0_8, %c0_9, %c0_10] : memref<4x8x128xf32, #tpu.memory_space<vmem>>, vector<1x8x128xf32>
    %11 = vector.shape_cast %10 : vector<1x8x128xf32> to vector<8x128xf32>
    %c1_11 = arith.constant 1 : index
    %c0_12 = arith.constant 0 : index
    %c0_13 = arith.constant 0 : index
    %12 = vector.load %arg2[%c1_11, %c0_12, %c0_13] : memref<4x8x128xf32, #tpu.memory_space<vmem>>, vector<1x8x128xf32>
    %13 = vector.shape_cast %12 : vector<1x8x128xf32> to vector<8x128xf32>
    %c2_14 = arith.constant 2 : index
    %c0_15 = arith.constant 0 : index
    %c0_16 = arith.constant 0 : index
    %14 = vector.load %arg2[%c2_14, %c0_15, %c0_16] : memref<4x8x128xf32, #tpu.memory_space<vmem>>, vector<1x8x128xf32>
    %15 = vector.shape_cast %14 : vector<1x8x128xf32> to vector<8x128xf32>
    %16 = arith.addf %11, %15 : vector<8x128xf32>
    %c3_17 = arith.constant 3 : index
    %c0_18 = arith.constant 0 : index
    %c0_19 = arith.constant 0 : index
    %17 = vector.load %arg2[%c3_17, %c0_18, %c0_19] : memref<4x8x128xf32, #tpu.memory_space<vmem>>, vector<1x8x128xf32>
    %18 = vector.shape_cast %17 : vector<1x8x128xf32> to vector<8x128xf32>
    %19 = arith.addf %13, %18 : vector<8x128xf32>
    %20 = arith.minimumf %6, %16 : vector<8x128xf32>
    %21 = arith.maximumf %1, %11 : vector<8x128xf32>
    %22 = arith.subf %20, %21 : vector<8x128xf32>
    %23 = arith.minimumf %9, %19 : vector<8x128xf32>
    %24 = arith.maximumf %3, %13 : vector<8x128xf32>
    %25 = arith.subf %23, %24 : vector<8x128xf32>
    %26 = arith.mulf %22, %25 : vector<8x128xf32>
    %cst = arith.constant 0.000000e+00 : f32
    %27 = vector.broadcast %cst : f32 to vector<8x128xf32>
    %28 = arith.maximumf %26, %27 : vector<8x128xf32>
    %29 = arith.subf %6, %1 : vector<8x128xf32>
    %30 = arith.subf %9, %3 : vector<8x128xf32>
    %31 = arith.mulf %29, %30 : vector<8x128xf32>
    %32 = arith.subf %16, %11 : vector<8x128xf32>
    %33 = arith.subf %19, %13 : vector<8x128xf32>
    %34 = arith.mulf %32, %33 : vector<8x128xf32>
    %35 = arith.addf %31, %34 : vector<8x128xf32>
    %36 = arith.subf %35, %28 : vector<8x128xf32>
    %cst_20 = arith.constant 9.99999997E-7 : f32
    %37 = vector.broadcast %cst_20 : f32 to vector<8x128xf32>
    %38 = arith.addf %36, %37 : vector<8x128xf32>
    %39 = arith.divf %28, %38 : vector<8x128xf32>
    %40 = arith.maximumf %6, %16 : vector<8x128xf32>
    %41 = arith.minimumf %1, %11 : vector<8x128xf32>
    %42 = arith.subf %40, %41 : vector<8x128xf32>
    %43 = arith.maximumf %9, %19 : vector<8x128xf32>
    %44 = arith.minimumf %3, %13 : vector<8x128xf32>
    %45 = arith.subf %43, %44 : vector<8x128xf32>
    %46 = arith.mulf %42, %45 : vector<8x128xf32>
    %47 = arith.subf %46, %36 : vector<8x128xf32>
    %cst_21 = arith.constant 9.99999997E-7 : f32
    %48 = vector.broadcast %cst_21 : f32 to vector<8x128xf32>
    %49 = arith.addf %46, %48 : vector<8x128xf32>
    %50 = arith.divf %47, %49 : vector<8x128xf32>
    %51 = arith.subf %39, %50 : vector<8x128xf32>
    %52 = vector.shape_cast %51 : vector<8x128xf32> to vector<1x8x128xf32>
    %cst_22 = arith.constant dense<0.000000e+00> : vector<8x128xf32>
    %53 = vector.multi_reduction <add>, %52, %cst_22 [0] : vector<1x8x128xf32> to vector<8x128xf32>
    %c0_23 = arith.constant 0 : index
    %c0_24 = arith.constant 0 : index
    %c0_25 = arith.constant 0 : index
    %54 = vector.load %arg3[%c0_23, %c0_24, %c0_25] : memref<1x8x128xf32, #tpu.memory_space<vmem>>, vector<1x8x128xf32>
    %55 = vector.shape_cast %54 : vector<1x8x128xf32> to vector<8x128xf32>
    %56 = vector.shape_cast %53 : vector<8x128xf32> to vector<1x8x128xf32>
    tpu.vector_store %arg3[%c0_23, %c0_24, %c0_25], %56 {strides = array<i32>} : memref<1x8x128xf32, #tpu.memory_space<vmem>>, vector<1x8x128xf32>,
    return
  }
  func.func @transform_0(%arg0: i32) -> (i32, i32, i32) {
    %c0_i32 = arith.constant 0 : i32
    %c0_i32_0 = arith.constant 0 : i32
    %c0_i32_1 = arith.constant 0 : i32
    return %c0_i32, %arg0, %c0_i32_0 : i32, i32, i32
  }
  func.func @transform_1(%arg0: i32) -> (i32, i32, i32) {
    %c0_i32 = arith.constant 0 : i32
    %c0_i32_0 = arith.constant 0 : i32
    %c0_i32_1 = arith.constant 0 : i32
    return %c0_i32, %arg0, %c0_i32_0 : i32, i32, i32
  }
  func.func @transform_2(%arg0: i32) -> (i32, i32, i32) {
    %c0_i32 = arith.constant 0 : i32
    %c0_i32_0 = arith.constant 0 : i32
    %c0_i32_1 = arith.constant 0 : i32
    return %arg0, %c0_i32, %c0_i32_0 : i32, i32, i32
  }
}

</mosaic_0001>

<bundles_post_ra>
// kernel: tpu_custom_call.1
= control target key start
LH: loop header
LB: loop body
LE: loop exit
PB: predicated region body
PF: predicated region fallthrough
CT: control target
= control target key end

     0   :  { %7 = vsyncpa [#allocation3], 0  ;;  %s244_s0 = inlined_call_operand.hbm [shape: f32[4,8,128], index: 0, kind: input, shape index: {}]   ;;  %s245_s1 = inlined_call_operand.hbm [shape: f32[4,8,128], index: 1, kind: input, shape index: {}]   ;;  %s246_s2 = inlined_call_operand.hbm [shape: f32[1,8,128], index: 2, kind: output, shape index: {}]  }
   0x1   :  { %8 = vsyncpa [#allocation6], 0 }
   0x2   :  { %9 = vsyncpa [#allocation4], 0  ;;  %s188_s9 = smov [#allocation2]   ;;  %s116_s13 = scalar_lea.hbm %s244_s0, 512 }
   0x3   :  { %s15_s10 = sshll.u32 %s188_s9, 4  ;;  %p117_p0 = scmp.ne.s32.totalorder %s244_s0, %s116_s13  ;;  %s16_s10 = int_to_ptr.vmem [resolvable:$true] %s15_s10 }
   0x4   :  { %p120_p1 = scmp.lt.u32.totalorder %s116_s13, %s244_s0 }
   0x6   :  { %p122_p2 = pnand %p120_p1, %p117_p0 }
   0x8   :  { %125 = shalt.err (!%p122_p2)
}
   0x9   :  { %s126_s18 = scalar_lea.vmem %s16_s10, 512  ;;  %p131_p4 = scmp.lt.s32.totalorder %s16_s10, %s16_s10 }
   0xa   :  { %p127_p3 = scmp.ne.s32.totalorder %s16_s10, %s126_s18  ;;  %p132_p5 = scmp.lt.s32.totalorder %s126_s18, %s126_s18 }
   0xc   :  { %p133_p6 = por %p132_p5, %p131_p4 }
   0xe   :  { %p134_p7 = pnand %p133_p6, %p127_p3 }
  0x10   :  { %137 = shalt.err (!%p134_p7)
}
  0x11   :  { %s189_s19 = smov 128   ;;  %s190_s20 = smov 8  }
  0x12   :  { %21 = dma.hbm_to_vmem [thread:$0]  %s244_s0, 512, %s16_s10, [#allocation3], %s189_s19, %s189_s19, %s190_s20  }
  0x13   :  { %s191_s23 = smov [#allocation5]   ;;  %s138_s27 = scalar_lea.hbm %s245_s1, 512 }
  0x14   :  { %s27_s24 = sshll.u32 %s191_s23, 4  ;;  %p139_p8 = scmp.ne.s32.totalorder %s245_s1, %s138_s27  ;;  %s28_s24 = int_to_ptr.vmem [resolvable:$true] %s27_s24 }
  0x15   :  { %p142_p9 = scmp.lt.u32.totalorder %s138_s27, %s245_s1 }
  0x17   :  { %p144_p10 = pnand %p142_p9, %p139_p8 }
  0x19   :  { %147 = shalt.err (!%p144_p10)
}
  0x1a   :  { %s148_s4 = scalar_lea.vmem %s28_s24, 512  ;;  %p153_p12 = scmp.lt.s32.totalorder %s28_s24, %s28_s24 }
  0x1b   :  { %p149_p11 = scmp.ne.s32.totalorder %s28_s24, %s148_s4  ;;  %p154_p13 = scmp.lt.s32.totalorder %s148_s4, %s148_s4 }
  0x1d   :  { %p155_p0 = por %p154_p13, %p153_p12 }
  0x1f   :  { %p156_p1 = pnand %p155_p0, %p149_p11 }
  0x21   :  { %159 = shalt.err (!%p156_p1)
}
  0x22   :  { %33 = dma.hbm_to_vmem [thread:$0]  %s245_s1, 512, %s28_s24, [#allocation6], %s189_s19, %s189_s19, %s190_s20  }
  0x23   :  { %182 = dma.done.wait [#allocation3], 512  }
  0x24   :  { %183 = vsyncadd [#allocation3], 4294966784 }
  0x25   :  { %184 = dma.done.wait [#allocation6], 512  }
  0x26   :  { %185 = vsyncadd [#allocation6], 4294966784  ;;  %v40_v0 = vld [vmem:[#allocation2] sm:$0xff]  ;;  %v42_v1 = vld [vmem:[#allocation2 + $0x8] sm:$0xff]  ;;  %s192_s1 = smov [#allocation7]  }
  0x27   :  { %v44_v2 = vld [vmem:[#allocation2 + $0x10] sm:$0xff]  ;;  %v47_v4 = vld [vmem:[#allocation2 + $0x18] sm:$0xff]  ;;  %v49_v5 = vld [vmem:[#allocation5] sm:$0xff]  ;;  %s97_s6 = sshll.u32 %s192_s1, 4  ;;  %s98_s6 = int_to_ptr.vmem [resolvable:$true] %s97_s6 }
  0x28   :  { %v45_v3 = vadd.f32 %v44_v2, %v40_v0  ;;  %v51_v6 = vld [vmem:[#allocation5 + $0x8] sm:$0xff]  ;;  %v48_v7 = vadd.f32 %v47_v4, %v42_v1  ;;  %v53_v8 = vld [vmem:[#allocation5 + $0x10] sm:$0xff]  ;;  %v56_v9 = vld [vmem:[#allocation5 + $0x18] sm:$0xff]  ;;  %v59_v10 = vmax.f32 %v40_v0, %v49_v5  ;;  %v78_v16 = vmin.f32 %v40_v0, %v49_v5  ;;  %s160_s7 = scalar_lea.vmem %s98_s6, 128  ;;  %p165_p3 = scmp.lt.s32.totalorder %s98_s6, %s98_s6 }
  0x29   :  { %v54_v11 = vadd.f32 %v53_v8, %v49_v5  ;;  %v57_v12 = vadd.f32 %v56_v9, %v51_v6  ;;  %v62_v13 = vmax.f32 %v42_v1, %v51_v6  ;;  %v81_v17 = vmin.f32 %v42_v1, %v51_v6  ;;  %p161_p2 = scmp.ne.s32.totalorder %s98_s6, %s160_s7  ;;  %p166_p4 = scmp.lt.s32.totalorder %s160_s7, %s160_s7 }
  0x2a   :  { %v66_v14 = vsub.f32 %v45_v3, %v40_v0  ;;  %v67_v15 = vsub.f32 %v48_v7, %v42_v1 }
  0x2b   :  { %v58_v18 = vmin.f32 %v45_v3, %v54_v11  ;;  %v61_v19 = vmin.f32 %v48_v7, %v57_v12  ;;  %v69_v20 = vsub.f32 %v54_v11, %v49_v5  ;;  %v70_v21 = vsub.f32 %v57_v12, %v51_v6  ;;  %p167_p5 = por %p166_p4, %p165_p3 }
  0x2c   :  { %v68_v22 = vmul.f32 %v67_v15, %v66_v14  ;;  %v77_v23 = vmax.f32 %v45_v3, %v54_v11  ;;  %v80_v24 = vmax.f32 %v48_v7, %v57_v12 }
  0x2d   :  { %v60_v25 = vsub.f32 %v58_v18, %v59_v10  ;;  %v63_v26 = vsub.f32 %v61_v19, %v62_v13  ;;  %v71_v27 = vmul.f32 %v70_v21, %v69_v20  ;;  %p168_p6 = pnand %p167_p5, %p161_p2 }
  0x2e   :  { %v79_v28 = vsub.f32 %v77_v23, %v78_v16  ;;  %v82_v29 = vsub.f32 %v80_v24, %v81_v17 }
  0x2f   :  { %v64_v30 = vmul.f32 %v63_v26, %v60_v25  ;;  %v72_v31 = vadd.f32 %v71_v27, %v68_v22 }
  0x30   :  { %v83_v32 = vmul.f32 %v82_v29, %v79_v28 }
  0x31   :  { %v65_v33 = vmax.f32 %v64_v30, 0.0 }
  0x32   :  { %v85_v34 = vadd.f32 1e-06, %v83_v32 }
  0x33   :  { %v73_v35 = vsub.f32 %v72_v31, %v65_v33 }
  0x34   :  { %112 = vrcp.f32 %v85_v34 }
  0x35   :  { %v74_v36 = vadd.f32 1e-06, %v73_v35  ;;  %v84_v37 = vsub.f32 %v83_v32, %v73_v35 }
  0x37   :  { %114 = vrcp.f32 %v74_v36 }
  0x3e   :  { %v113_v38 = vpop.eup %112 }
  0x3f   :  { %v87_v39 = vmul.f32 %v113_v38, %v84_v37 }
  0x41   :  { %v115_v40 = vpop.eup %114 }
  0x42   :  { %v76_v41 = vmul.f32 %v115_v40, %v65_v33 }
  0x44   :  { %v88_v42 = vsub.f32 %v76_v41, %v87_v39 }
  0x46   :  { %90 = vst [vmem:[#allocation7] sm:$0xff] %v88_v42 }
  0x47   :  { %171 = shalt.err (!%p168_p6)
}
  0x48   :  { %s172_s10 = scalar_lea.hbm %s246_s2, 128 }
  0x49   :  { %p173_p7 = scmp.ne.s32.totalorder %s246_s2, %s172_s10  ;;  %p176_p8 = scmp.lt.u32.totalorder %s172_s10, %s246_s2 }
  0x4b   :  { %p178_p9 = pnand %p176_p8, %p173_p7 }
  0x4d   :  { %181 = shalt.err (!%p178_p9)
}
  0x4e   :  { %100 = dma.vmem_to_hbm [thread:$0]  %s98_s6, 128, %s246_s2, [#allocation4]  }
  0x4f   :  { %186 = dma.done.wait [#allocation4], 128  }
  0x50   :  { %187 = vsyncadd [#allocation4], 4294967168 }
  0x51   :  { %104 = vsyncpa [#allocation3], 1 }
  0x52   :  { %105 = vsyncpa [#allocation6], 1 }
  0x53   :  { %106 = vsyncpa [#allocation4], 1 }

</bundles_post_ra>
